<compile_context>
chip_gen: v7x
topology: tpu7x:2x2x1
jax: 0.10.0
libtpu: 0.0.40
codegen_flags: <defaults>
</compile_context>

<pallas_src>
import jax
import jax.numpy as jnp
from jax.experimental import pallas as pl
from jax.experimental.pallas import tpu as pltpu


_LANES = 1024        # lane-axis width (multiple of 128) -> fully packed vregs
_BLOCK_ROWS = 512    # sublane rows per block -> 512*1024*4 B = 2 MiB f32 / input block
_NUM_CHUNKS = 2      # leading 'parallel' axis (both TCs on v7x; ~free on v5e/v6e)


def _make_l1_sum_kernel(block_rows: int, lanes: int):
    sub = block_rows // 8

    def kernel(x_hat_ref, x_ref, out_ref, acc_ref):
        i = pl.program_id(1)  # streaming (reduction) axis

        @pl.when(i == 0)
        def _():
            acc_ref[...] = jnp.zeros_like(acc_ref)

        diff = jnp.abs(
            x_ref[...].astype(jnp.float32) - x_hat_ref[...].astype(jnp.float32)
        )
        # (block_rows, lanes) -> (sub, 8, lanes): splitting the sublane axis at a
        # multiple of 8 respects the (8,128) tiling, and reducing the leading axis
        # is a chain of full-vreg VPU adds (no XLU / scalar serialization).
        acc_ref[...] += jnp.sum(diff.reshape(sub, 8, lanes), axis=0)

        @pl.when(i == pl.num_programs(1) - 1)
        def _():
            out_ref[...] = acc_ref[...]

    return kernel


def wav_reconstruction_loss(x_hat: jax.Array, x: jax.Array) -> jax.Array:
    """L1 (mean absolute error) between x and x_hat, both shaped (B, 1, T)."""
    assert x_hat.shape == x.shape, "x_hat and x must have the same shape"

    n = 1
    for d in x.shape:
        n *= d

    lanes = _LANES
    rows = pl.cdiv(n, lanes)
    # Block rows: multiple of 8, capped at _BLOCK_ROWS, no bigger than needed.
    block_rows = max(8, min(_BLOCK_ROWS, ((rows + 7) // 8) * 8))
    num_chunks = _NUM_CHUNKS
    rows_per_round = num_chunks * block_rows
    total_rows = pl.cdiv(rows, rows_per_round) * rows_per_round
    steps = total_rows // rows_per_round

    padded = total_rows * lanes
    flat_hat = x_hat.reshape(-1)
    flat_ref = x.reshape(-1)
    if padded != n:
        pad = padded - n
        flat_hat = jnp.pad(flat_hat, (0, pad))
        flat_ref = jnp.pad(flat_ref, (0, pad))
    xh2 = flat_hat.reshape(total_rows, lanes)
    x2 = flat_ref.reshape(total_rows, lanes)

    kernel = _make_l1_sum_kernel(block_rows, lanes)
    in_map = lambda c, i: (c * steps + i, 0)

    partials = pl.pallas_call(
        kernel,
        out_shape=jax.ShapeDtypeStruct((num_chunks * 8, lanes), jnp.float32),
        grid_spec=pltpu.PrefetchScalarGridSpec(
            num_scalar_prefetch=0,
            grid=(num_chunks, steps),
            in_specs=[
                pl.BlockSpec((block_rows, lanes), in_map),
                pl.BlockSpec((block_rows, lanes), in_map),
            ],
            out_specs=pl.BlockSpec((8, lanes), lambda c, i: (c, 0)),
            scratch_shapes=[pltpu.VMEM((8, lanes), jnp.float32)],
        ),
        compiler_params=pltpu.CompilerParams(
            dimension_semantics=("parallel", "arbitrary"),
            vmem_limit_bytes=32 * 1024 * 1024,
        ),
        cost_estimate=pl.CostEstimate(
            flops=2 * n,
            transcendentals=0,
            bytes_accessed=2 * n * x.dtype.itemsize + num_chunks * 8 * lanes * 4,
        ),
    )(xh2, x2)

    # Final tree reduce of the small (num_chunks*8, lanes) partial-sum slab and
    # the 'mean' divide (torch divisor = original element count, not padded).
    return jnp.sum(partials) / jnp.float32(n)


if __name__ == "__main__":
    key = jax.random.PRNGKey(0)
    k1, k2 = jax.random.split(key)

    B, C, T = 2, 1, 1024
    x_hat = jax.random.normal(k1, (B, C, T), dtype=jnp.float32)
    x = jax.random.normal(k2, (B, C, T), dtype=jnp.float32)

    loss = wav_reconstruction_loss(x_hat, x)
    loss = jax.block_until_ready(loss)

    # Reference check against plain-JAX L1 (mean abs error).
    ref = jnp.mean(jnp.abs(x - x_hat))
    assert jnp.allclose(loss, ref, rtol=1e-6, atol=1e-6), (loss, ref)

    print("KERNEL_OK")
</pallas_src>

<mosaic_0001>
module attributes {stable_mosaic.version = 11 : i64} {
  func.func @kernel(%arg0: i32, %arg1: i32, %arg2: memref<8x1024xf32, #tpu.memory_space<vmem>>, %arg3: memref<8x1024xf32, #tpu.memory_space<vmem>>, %arg4: memref<8x1024xf32, #tpu.memory_space<vmem>>, %arg5: memref<8x1024xf32, #tpu.memory_space<vmem>>) attributes {dimension_semantics = [#tpu.dimension_semantics<parallel>, #tpu.dimension_semantics<arbitrary>], iteration_bounds = array<i64: 2, 1>, scalar_prefetch = 0 : i64, scratch_operands = 1 : i64, tpu.core_type = #tpu.core_type<tc>, window_params = [{transform_indices = @transform_0, window_bounds = array<i64: 8, 1024>}, {transform_indices = @transform_1, window_bounds = array<i64: 8, 1024>}, {transform_indices = @transform_2, window_bounds = array<i64: 8, 1024>}]} {
    %c0_i32 = arith.constant 0 : i32
    %0 = arith.cmpi eq, %arg1, %c0_i32 : i32
    %1 = arith.extui %0 : i1 to i32
    %c0_i32_0 = arith.constant 0 : i32
    %2 = arith.cmpi ne, %1, %c0_i32_0 : i32
    scf.if %2 {
      %cst_10 = arith.constant 0.000000e+00 : f32
      %15 = vector.broadcast %cst_10 : f32 to vector<8x1024xf32>
      %c0_11 = arith.constant 0 : index
      %c0_12 = arith.constant 0 : index
      %16 = vector.load %arg5[%c0_11, %c0_12] : memref<8x1024xf32, #tpu.memory_space<vmem>>, vector<8x1024xf32>
      tpu.vector_store %arg5[%c0_11, %c0_12], %15 {strides = array<i32>} : memref<8x1024xf32, #tpu.memory_space<vmem>>, vector<8x1024xf32>,
    } else {
    }
    %c0 = arith.constant 0 : index
    %c0_1 = arith.constant 0 : index
    %3 = vector.load %arg3[%c0, %c0_1] : memref<8x1024xf32, #tpu.memory_space<vmem>>, vector<8x1024xf32>
    %c0_2 = arith.constant 0 : index
    %c0_3 = arith.constant 0 : index
    %4 = vector.load %arg2[%c0_2, %c0_3] : memref<8x1024xf32, #tpu.memory_space<vmem>>, vector<8x1024xf32>
    %5 = arith.subf %3, %4 : vector<8x1024xf32>
    %6 = math.absf %5 : vector<8x1024xf32>
    %c0_4 = arith.constant 0 : index
    %c0_5 = arith.constant 0 : index
    %7 = vector.load %arg5[%c0_4, %c0_5] : memref<8x1024xf32, #tpu.memory_space<vmem>>, vector<8x1024xf32>
    %8 = vector.shape_cast %6 : vector<8x1024xf32> to vector<1x8x1024xf32>
    %cst = arith.constant dense<0.000000e+00> : vector<8x1024xf32>
    %9 = vector.multi_reduction <add>, %8, %cst [0] : vector<1x8x1024xf32> to vector<8x1024xf32>
    %10 = arith.addf %7, %9 : vector<8x1024xf32>
    %c0_6 = arith.constant 0 : index
    %c0_7 = arith.constant 0 : index
    %11 = vector.load %arg5[%c0_6, %c0_7] : memref<8x1024xf32, #tpu.memory_space<vmem>>, vector<8x1024xf32>
    tpu.vector_store %arg5[%c0_6, %c0_7], %10 {strides = array<i32>} : memref<8x1024xf32, #tpu.memory_space<vmem>>, vector<8x1024xf32>,
    %c0_i32_8 = arith.constant 0 : i32
    %12 = arith.cmpi eq, %arg1, %c0_i32_8 : i32
    %13 = arith.extui %12 : i1 to i32
    %c0_i32_9 = arith.constant 0 : i32
    %14 = arith.cmpi ne, %13, %c0_i32_9 : i32
    scf.if %14 {
      %c0_10 = arith.constant 0 : index
      %c0_11 = arith.constant 0 : index
      %15 = vector.load %arg5[%c0_10, %c0_11] : memref<8x1024xf32, #tpu.memory_space<vmem>>, vector<8x1024xf32>
      %c0_12 = arith.constant 0 : index
      %c0_13 = arith.constant 0 : index
      %16 = vector.load %arg4[%c0_12, %c0_13] : memref<8x1024xf32, #tpu.memory_space<vmem>>, vector<8x1024xf32>
      tpu.vector_store %arg4[%c0_12, %c0_13], %15 {strides = array<i32>} : memref<8x1024xf32, #tpu.memory_space<vmem>>, vector<8x1024xf32>,
    } else {
    }
    return
  }
  func.func @transform_0(%arg0: i32, %arg1: i32) -> (i32, i32) {
    %c1_i32 = arith.constant 1 : i32
    %0 = arith.muli %arg0, %c1_i32 : i32
    %1 = arith.addi %0, %arg1 : i32
    %c0_i32 = arith.constant 0 : i32
    %c0_i32_0 = arith.constant 0 : i32
    return %1, %c0_i32 : i32, i32
  }
  func.func @transform_1(%arg0: i32, %arg1: i32) -> (i32, i32) {
    %c1_i32 = arith.constant 1 : i32
    %0 = arith.muli %arg0, %c1_i32 : i32
    %1 = arith.addi %0, %arg1 : i32
    %c0_i32 = arith.constant 0 : i32
    %c0_i32_0 = arith.constant 0 : i32
    return %1, %c0_i32 : i32, i32
  }
  func.func @transform_2(%arg0: i32, %arg1: i32) -> (i32, i32) {
    %c0_i32 = arith.constant 0 : i32
    %c0_i32_0 = arith.constant 0 : i32
    return %arg0, %c0_i32 : i32, i32
  }
}

</mosaic_0001>

<bundles_post_ra>
// kernel: tpu_custom_call.1
= control target key start
LH: loop header
LB: loop body
LE: loop exit
PB: predicated region body
PF: predicated region fallthrough
CT: control target
= control target key end

     0   :  { %7 = vsyncpa [#allocation4], 0  ;;  %s921_s0 = inlined_call_operand.hbm [shape: f32[16,1024], index: 0, kind: input, shape index: {}]   ;;  %s922_s1 = inlined_call_operand.hbm [shape: f32[16,1024], index: 1, kind: input, shape index: {}]   ;;  %s923_s2 = inlined_call_operand.hbm [shape: f32[16,1024], index: 2, kind: output, shape index: {}]  }
   0x1   :  { %9 = vsyncpa [#allocation4 + $0x1], 0 }
   0x2   :  { %10 = vsyncpa [#allocation7], 0 }
   0x3   :  { %12 = vsyncpa [#allocation7 + $0x1], 0 }
   0x4   :  { %13 = vsyncpa [#allocation5], 0 }
   0x5   :  { %15 = vsyncpa [#allocation5 + $0x1], 0  ;;  %s686_s9 = smov 0   ;;  %s688_s10 = smov 0  }
   0x6   :  { %s690_s11 = smov 0   ;;  %s692_s12 = smov 0  }
   0x7   :  { %s694_s13 = smov 0   ;;  %s696_s14 = smov 0  }
   0x8 LB: > { %s431_s15 = sadd.s32 4294967295, %s666_s14   ;;  %s432_s16 = sadd.s32 4294967294, %s666_s14   ;;  %s666_s14 = sphi %s696_s14, %s21_s14   ;;  %s662_s13 = sphi %s694_s13, %s943_s13   ;;  %s658_s12 = sphi %s692_s12, %s942_s12   ;;  %s654_s11 = sphi %s690_s11, %s941_s11   ;;  %s650_s10 = sphi %s688_s10, %s940_s10   ;;  %s646_s9 = sphi %s686_s9, %s939_s9  }
   0x9   : > { %s33_s17 = sadd.s32 1, %s662_s13  ;;  %s42_s18 = sadd.s32 1, %s654_s11 }
   0xa   : > { %p35_p0 = scmp.ge.s32.totalorder %s33_s17, 2  ;;  %p49_p1 = scmp.ne.s32.totalorder %s654_s11, %s650_s10 }
   0xb   : > { %p50_p2 = scmp.eq.s32.totalorder %s666_s14, 0  ;;  %p55_p3 = scmp.ne.s32.totalorder %s650_s10, %s646_s9 }
   0xc   : > { %s945_s17 = smov (%p35_p0, %s33_s17), 0  ;;  %p56_p5 = scmp.eq.s32.totalorder %s431_s15, 0 }
   0xd   : > { %p727_p4 = por %p50_p2, %p49_p1  ;;  %s39_s20 = ssub.s32 %s662_s13, %s945_s17 }
   0xe   : > { %p107_p6 = scmp.eq.s32.totalorder %s431_s15, 1  ;;  %p40_p7 = scmp.eq.s32.totalorder %s39_s20, 0 }
   0xf   : > { %p733_p8 = por %p56_p5, %p55_p3  ;;  %p113_p10 = scmp.eq.s32.totalorder %s432_s16, 1 }
  0x10   : > { %p737_p9 = por %p107_p6, %p49_p1  ;;  %p470_p13 = scmp.lt.s32.totalorder %s666_s14, 2 }
  0x11   : > { %s927_s21 = scalar_select %p733_p8, 1, 0 }
  0x12   : > { %s928_s22 = scalar_select %p737_p9, 1, 0 }
  0x13   : > { %s742_s23 = scalar_select %p40_p7, %s654_s11, %s42_s18  }
  0x14   : > { %p744_p11 = por %p113_p10, %p55_p3  ;;  %s751_s25 = sand.u32 1, %s654_s11  }
  0x15   : > { %s435_s26 = sshll.u32 %s751_s25, 6  ;;  %s450_s27 = sshll.u32 %s662_s13, 10 }
  0x16   : > { %s929_s24 = scalar_select %p744_p11, 1, 0 }
  0x17   : > { %s760_s30 = scalar_lea.hbm %s921_s0, %s450_s27  ;;  %s137_s3 = scalar_lea.vmem [#allocation3], %s435_s26 }
  0x18   : > { %s146_s4 = sshll.u32 %s137_s3, 4  ;;  %p768_p0 = pnand %p470_p13, %p727_p4  ;;  %s764_s4 = int_to_ptr.vmem [resolvable:$true] %s146_s4 }
  0x19   : > { %s134_s6 = scalar_lea.sflag [#allocation4], %s751_s25  ;;  %s520_s7 = scalar_lea.hbm %s760_s30, 1024 }
  0x1a   : > { %p521_p3 = scmp.ne.s32.totalorder %s760_s30, %s520_s7  ;;  %p522_p5 = pneg %p768_p0 }
  0x1b   : > { %s525_s16 = scalar_lea.hbm %s921_s0, 2048  ;;  %p526_p4 = scmp.lt.u32.totalorder %s760_s30, %s921_s0 }
  0x1c   : > { %p523_p6 = pnand %p522_p5, %p521_p3  ;;  %p527_p10 = scmp.lt.u32.totalorder %s525_s16, %s520_s7 }
  0x1d   : > { %p529_p12 = scmp.lt.u32.totalorder %s520_s7, %s760_s30 }
  0x1e   : > { %p524_p7 = pneg %p523_p6  ;;  %p528_p13 = por %p527_p10, %p526_p4 }
  0x20   : > { %p530_p1 = por %p529_p12, %p528_p13 }
  0x22   : > { %p531_p2 = pnand %p530_p1, %p524_p7 }
  0x24   : > { %534 = shalt.err (!%p531_p2)
}
  0x25   : > { %s535_s20 = scalar_lea.vmem %s764_s4, 1024  ;;  %s668_s28 = smov [#allocation3]  }
  0x26   : > { %p536_p3 = scmp.ne.s32.totalorder %s764_s4, %s535_s20  ;;  %s540_s29 = sshll.u32 %s668_s28, 4  ;;  %s541_s29 = int_to_ptr.vmem [resolvable:$false] %s540_s29 }
  0x27   : > { %s542_s3 = scalar_lea.vmem %s541_s29, 2048  ;;  %p543_p9 = scmp.lt.s32.totalorder %s764_s4, %s541_s29 }
  0x28   : > { %p538_p6 = pnand %p536_p3, %p522_p5  ;;  %p544_p4 = scmp.lt.s32.totalorder %s542_s3, %s535_s20 }
  0x2a   : > { %p539_p11 = pneg %p538_p6  ;;  %p545_p10 = por %p544_p4, %p543_p9 }
  0x2c   : > { %p546_p12 = pnand %p545_p10, %p539_p11 }
  0x2e   : > { %549 = shalt.err (!%p546_p12)
}
  0x2f   : > { %462 = dma.hbm_to_vmem [thread:$0]  (!%p768_p0), %s760_s30, 1024, %s764_s4, %s134_s6  }
  0x30   : > { %p931_p1 = scmp.lt.s32.totalorder %s666_s14, 3  ;;  %p932_p2 = scmp.ge.s32.totalorder %s666_s14, 1 }
  0x31   : > { %s813_s16 = scalar_lea.hbm %s922_s1, %s450_s27  ;;  %s157_s18 = scalar_lea.vmem [#allocation6], %s435_s26 }
  0x32   : > { %p804_p7 = pnand %p932_p2, %p931_p1  ;;  %s166_s19 = sshll.u32 %s157_s18, 4  ;;  %s167_s19 = int_to_ptr.vmem [resolvable:$true] %s166_s19 }
  0x33   : > { %s154_s30 = scalar_lea.sflag [#allocation7], %s751_s25  ;;  %s550_s4 = scalar_lea.hbm %s813_s16, 1024 }
  0x34   : > { %s933_s7 = scalar_select %p804_p7, 1, 0 }
  0x35   : > { %p551_p9 = scmp.ne.s32.totalorder %s813_s16, %s550_s4  ;;  %s555_s27 = scalar_lea.hbm %s922_s1, 2048 }
  0x36   : > { %p556_p3 = scmp.lt.u32.totalorder %s813_s16, %s922_s1  ;;  %p557_p6 = scmp.lt.u32.totalorder %s555_s27, %s550_s4 }
  0x37   : > { %p553_p11 = pnand %p551_p9, %p522_p5  ;;  %p559_p10 = scmp.lt.u32.totalorder %s550_s4, %s813_s16 }
  0x38   : > { %p558_p4 = por %p557_p6, %p556_p3 }
  0x39   : > { %p554_p13 = pneg %p553_p11 }
  0x3a   : > { %p560_p12 = por %p559_p10, %p558_p4 }
  0x3c   : > { %p561_p1 = pnand %p560_p12, %p554_p13 }
  0x3e   : > { %564 = shalt.err (!%p561_p1)
}
  0x3f   : > { %s565_s25 = scalar_lea.vmem %s167_s19, 1024  ;;  %s669_s26 = smov [#allocation6]  }
  0x40   : > { %p566_p2 = scmp.ne.s32.totalorder %s167_s19, %s565_s25  ;;  %s570_s3 = sshll.u32 %s669_s26, 4  ;;  %s571_s3 = int_to_ptr.vmem [resolvable:$false] %s570_s3 }
  0x41   : > { %s572_s8 = scalar_lea.vmem %s571_s3, 2048  ;;  %p573_p8 = scmp.lt.s32.totalorder %s167_s19, %s571_s3 }
  0x42   : > { %p568_p9 = pnand %p566_p2, %p522_p5  ;;  %p574_p7 = scmp.lt.s32.totalorder %s572_s8, %s565_s25 }
  0x44   : > { %p569_p11 = pneg %p568_p9  ;;  %p575_p3 = por %p574_p7, %p573_p8 }
  0x46   : > { %p576_p6 = pnand %p575_p3, %p569_p11 }
  0x48   : > { %579 = shalt.err (!%p576_p6)
}
  0x49   : > { %465 = dma.hbm_to_vmem [thread:$0]  (!%p768_p0), %s813_s16, 1024, %s167_s19, %s154_s30  }
  0x4a   : > { %p934_p13 = scmp.ne.s32.totalorder %s933_s7, 0 }
  0x4b   : > { %s840_s15 = sand.u32 (!%p934_p13), 1, %s650_s10   ;;  %p935_p8 = scmp.ne.s32.totalorder (!%p934_p13), %s927_s21, 0 }
  0x4c   : > { %175 = sbr.rel (%p934_p13) target bundleno = 114 (0x72), region = 28  ;;  %s843_s18 = sshll.u32 (!%p934_p13), %s840_s15, 6 }
  0x4d   : > { %s178_s4 = scalar_lea.sflag (!%p934_p13), [#allocation4], %s840_s15  ;;  %s847_s6 = scalar_lea.vmem (!%p934_p13), [#allocation3], %s843_s18 }
  0x53   : > { %633 = dma.done.wait (%p935_p8), %s178_s4, 1024  }
  0x54   : > { %635 = vsyncadd (%p935_p8), %s178_s4, 4294966272  ;;  %s187_s5 = scalar_lea.sflag [#allocation7], %s840_s15  ;;  %s190_s7 = scalar_lea.vmem [#allocation6], %s843_s18 }
  0x55   : > { %637 = dma.done.wait (%p935_p8), %s187_s5, 1024  }
  0x56   : > { %639 = vsyncadd (%p935_p8), %s187_s5, 4294966272  ;;  %v230_v0 = vld [vmem:[%s190_s7] sm:$0xff]  ;;  %v231_v2 = vld [vmem:[%s190_s7 + $0x8] sm:$0xff]  ;;  %s215_s21 = scalar_lea.vmem [#allocation8], %s843_s18  ;;  %s452_s16 = sshll.u32 %s658_s12, 10 }
  0x57   : > { %v238_v1 = vld [vmem:[%s847_s6] sm:$0xff]  ;;  %v239_v4 = vld [vmem:[%s847_s6 + $0x8] sm:$0xff]  ;;  %v232_v5 = vld [vmem:[%s190_s7 + $0x10] sm:$0xff]  ;;  %s328_s19 = sshll.u32 %s215_s21, 4  ;;  %s872_s27 = scalar_lea.hbm %s923_s2, %s452_s16  ;;  %s874_s19 = int_to_ptr.vmem [resolvable:$true] %s328_s19 }
  0x58   : > { %v246_v3 = vsub.f32 %v230_v0, %v238_v1  ;;  %v240_v6 = vld [vmem:[%s847_s6 + $0x10] sm:$0xff]  ;;  %v247_v7 = vsub.f32 %v231_v2, %v239_v4  ;;  %v233_v9 = vld [vmem:[%s190_s7 + $0x18] sm:$0xff]  ;;  %v234_v11 = vld [vmem:[%s190_s7 + $0x20] sm:$0xff]  ;;  %s314_s12 = scalar_lea.sflag [#allocation5], %s840_s15  ;;  %s580_s28 = scalar_lea.vmem %s874_s19, 1024 }
  0x59   : > { %v248_v8 = vsub.f32 %v232_v5, %v240_v6  ;;  %v241_v10 = vld [vmem:[%s847_s6 + $0x18] sm:$0xff]  ;;  %v242_v14 = vld [vmem:[%s847_s6 + $0x20] sm:$0xff]  ;;  %v235_v15 = vld [vmem:[%s190_s7 + $0x28] sm:$0xff]  ;;  %p581_p0 = scmp.ne.s32.totalorder %s874_s19, %s580_s28  ;;  %p936_p5 = scmp.ne.s32.totalorder %s928_s22, 0 }
  0x5a   : > { %v254_v12 = vand.u32 2147483647, %v246_v3  ;;  %v249_v13 = vsub.f32 %v233_v9, %v241_v10  ;;  %v243_v16 = vld [vmem:[%s847_s6 + $0x28] sm:$0xff]  ;;  %v255_v17 = vand.u32 2147483647, %v247_v7  ;;  %v250_v19 = vsub.f32 %v234_v11, %v242_v14  ;;  %v236_v21 = vld [vmem:[%s190_s7 + $0x30] sm:$0xff] }
  0x5b   : > { %v256_v18 = vand.u32 2147483647, %v248_v8  ;;  %v251_v20 = vsub.f32 %v235_v15, %v243_v16  ;;  %v244_v22 = vld [vmem:[%s847_s6 + $0x30] sm:$0xff]  ;;  %v237_v25 = vld [vmem:[%s190_s7 + $0x38] sm:$0xff]  ;;  %p582_p7 = pnand %p581_p0, %p936_p5  ;;  %s670_s29 = smov [#allocation8]  }
  0x5c   : > { %305 = vst [vmem:[%s215_s21] sm:$0xff] %v254_v12  ;;  %v257_v23 = vand.u32 2147483647, %v249_v13  ;;  %v252_v24 = vsub.f32 %v236_v21, %v244_v22  ;;  %v245_v26 = vld [vmem:[%s847_s6 + $0x38] sm:$0xff]  ;;  %306 = vst [vmem:[%s215_s21 + $0x8] sm:$0xff] %v255_v17  ;;  %v258_v27 = vand.u32 2147483647, %v250_v19 }
  0x5d   : > { %307 = vst [vmem:[%s215_s21 + $0x10] sm:$0xff] %v256_v18  ;;  %v259_v28 = vand.u32 2147483647, %v251_v20  ;;  %v253_v29 = vsub.f32 %v237_v25, %v245_v26  ;;  %p583_p4 = pneg %p582_p7  ;;  %s584_s25 = sshll.u32 %s670_s29, 4  ;;  %s585_s25 = int_to_ptr.vmem [resolvable:$false] %s584_s25 }
  0x5e   : > { %308 = vst [vmem:[%s215_s21 + $0x18] sm:$0xff] %v257_v23  ;;  %v260_v30 = vand.u32 2147483647, %v252_v24  ;;  %309 = vst [vmem:[%s215_s21 + $0x20] sm:$0xff] %v258_v27  ;;  %s586_s26 = scalar_lea.vmem %s585_s25, 2048  ;;  %p587_p10 = scmp.lt.s32.totalorder %s874_s19, %s585_s25 }
  0x5f   : > { %310 = vst [vmem:[%s215_s21 + $0x28] sm:$0xff] %v259_v28  ;;  %v261_v31 = vand.u32 2147483647, %v253_v29  ;;  %p588_p12 = scmp.lt.s32.totalorder %s586_s26, %s580_s28 }
  0x60   : > { %311 = vst [vmem:[%s215_s21 + $0x30] sm:$0xff] %v260_v30 }
  0x61   : > { %312 = vst [vmem:[%s215_s21 + $0x38] sm:$0xff] %v261_v31  ;;  %p589_p1 = por %p588_p12, %p587_p10 }
  0x63   : > { %p590_p2 = pnand %p589_p1, %p583_p4 }
  0x65   : > { %593 = shalt.err (!%p590_p2)
}
  0x66   : > { %s594_s3 = scalar_lea.hbm %s872_s27, 1024  ;;  %s598_s18 = scalar_lea.hbm %s923_s2, 2048 }
  0x67   : > { %p595_p9 = scmp.ne.s32.totalorder %s872_s27, %s594_s3  ;;  %p599_p6 = scmp.lt.u32.totalorder %s872_s27, %s923_s2 }
  0x68   : > { %p600_p13 = scmp.lt.u32.totalorder %s598_s18, %s594_s3  ;;  %p602_p0 = scmp.lt.u32.totalorder %s594_s3, %s872_s27 }
  0x69   : > { %p596_p11 = pnand %p595_p9, %p936_p5 }
  0x6a   : > { %p601_p8 = por %p600_p13, %p599_p6 }
  0x6b   : > { %p597_p3 = pneg %p596_p11 }
  0x6c   : > { %p603_p7 = por %p602_p0, %p601_p8 }
  0x6e   : > { %p604_p4 = pnand %p603_p7, %p597_p3 }
  0x70   : > { %607 = shalt.err (!%p604_p4)
}
  0x71   : > { %457 = dma.vmem_to_hbm [thread:$0]  (%p936_p5), %s874_s19, 1024, %s872_s27, %s314_s12  }
  0x72 PF: > { %s340_s5 = sand.u32 1, %s646_s9   ;;  %p937_p10 = scmp.ne.s32.totalorder %s929_s24, 0 }
  0x73   : > { %p938_p12 = scmp.ge.s32.totalorder %s666_s14, 2  ;;  %s341_s7 = scalar_lea.sflag [#allocation5], %s340_s5 }
  0x75   : > { %p467_p1 = pnand %p938_p12, %p937_p10 }
  0x77   : > { %641 = dma.done.wait (!%p467_p1), %s341_s7, 1024  }
  0x78   : > { %643 = vsyncadd (!%p467_p1), %s341_s7, 4294966272  ;;  %s21_s14 = sadd.s32 1, %s666_s14   ;;  %s939_s9 = smov %s650_s10 }
  0x79   : > { %p18_p2 = scmp.ge.s32.totalorder %s21_s14, 4   ;;  %s940_s10 = smov %s654_s11 }
  0x7a   : > { %s941_s11 = smov %s742_s23  ;;  %s942_s12 = smov %s662_s13 }
  0x7b   : > { %s943_s13 = smov %s945_s17  ;;  %20 = sbr.rel (!%p18_p2) target bundleno = 8 (0x8), region = 94 }
  0x82   :  { %346 = vsyncpa [#allocation4], 1 }
  0x83   :  { %348 = vsyncpa [#allocation4 + $0x1], 1 }
  0x84   :  { %349 = vsyncpa [#allocation7], 1 }
  0x85   :  { %351 = vsyncpa [#allocation7 + $0x1], 1 }
  0x86   :  { %352 = vsyncpa [#allocation5], 1 }
  0x87   :  { %354 = vsyncpa [#allocation5 + $0x1], 1 }

</bundles_post_ra>
